<compile_context>
chip_gen: v7x
topology: tpu7x:2x2x1
jax: 0.10.0
libtpu: 0.0.40
codegen_flags: <defaults>
</compile_context>

<pallas_src>
import jax
import jax.numpy as jnp
from jax.experimental import pallas as pl
from jax.experimental.pallas import tpu as pltpu


LANE = 128      # TPU lane width
SUB = 8         # TPU sublane width
MAX_B_TILE = 256  # batch tile (rows) per grid step


def _round_up(n, m):
    return ((n + m - 1) // m) * m


def _leaky_relu(v, slope=0.01):
    return jnp.where(v >= 0, v, slope * v)


# ----------------------------------------------------------------------------
# Kernel
# ----------------------------------------------------------------------------
def ctg_kernel(xu_ref, w_ref, b_ref, o_ref):
    """Fused 5-layer MLP on one (tb, 128) batch tile.

    xu_ref : (tb, 128)      f32 activations (features zero-padded to 128 lanes)
    w_ref  : (5, 128, 128)  packed padded weights (f32 or bf16)
    b_ref  : (5, 1, 128)    packed padded biases (f32)
    o_ref  : (tb, 128)      f32 output (true result in lane 0)
    """
    cdt = w_ref.dtype          # matmul input dtype (f32 or bf16)
    n_layers = w_ref.shape[0]  # static

    h = xu_ref[...]            # f32
    for i in range(n_layers - 1):
        h = jnp.dot(h.astype(cdt), w_ref[i],
                    preferred_element_type=jnp.float32) + b_ref[i]
        h = _leaky_relu(h)

    h = jnp.dot(h.astype(cdt), w_ref[n_layers - 1],
                preferred_element_type=jnp.float32) + b_ref[n_layers - 1]
    o_ref[...] = jnp.maximum(h, 0.0)   # relu head


# ----------------------------------------------------------------------------
# One-time parameter preparation (hoisted out of the per-call path)
# ----------------------------------------------------------------------------
def prepare_params(params, param_dtype=jnp.bfloat16):
    """Pad every layer to (128,128)/(1,128), pack into two slabs. Call once."""
    ws, bs = [], []
    for (w, b) in params:
        fin, fout = w.shape
        assert fin <= LANE and fout <= LANE, "feature dims must fit in one lane tile"
        ws.append(jnp.pad(w.astype(jnp.float32),
                          ((0, LANE - fin), (0, LANE - fout))))
        bs.append(jnp.pad(b.astype(jnp.float32).reshape(1, -1),
                          ((0, 0), (0, LANE - fout))))
    w_packed = jnp.stack(ws).astype(param_dtype)   # (5, 128, 128)
    b_packed = jnp.stack(bs)                       # (5, 1, 128) f32
    return w_packed, b_packed


# ----------------------------------------------------------------------------
# Forward wrapper
# ----------------------------------------------------------------------------
@jax.jit
def ctg_nn_forward(x_rom, u_rom, packed_params):
    """Per-call path: only the activation is concatenated/padded here.

    (Splitting W1 to pass x_rom/u_rom directly would save this tiny concat+pad,
    but it forces a K=4 MXU contraction; we keep the safe, fully-aligned path.)
    """
    w_packed, b_packed = packed_params

    xu = jnp.concatenate([x_rom, u_rom], axis=1).astype(jnp.float32)
    B, d_in = xu.shape
    assert d_in <= LANE

    # Batch tiling: single tile for small B, 256-row tiles (parallel grid axis)
    # for large B so v7x's two TensorCores can split the work.
    Bp = _round_up(B, SUB)
    if Bp <= MAX_B_TILE:
        tb = Bp
    else:
        tb = MAX_B_TILE
        Bp = _round_up(B, MAX_B_TILE)

    xu_p = jnp.pad(xu, ((0, Bp - B), (0, LANE - d_in)))

    out_p = pl.pallas_call(
        ctg_kernel,
        out_shape=jax.ShapeDtypeStruct((Bp, LANE), jnp.float32),
        grid=(Bp // tb,),
        in_specs=[
            pl.BlockSpec((tb, LANE), lambda i: (i, 0)),          # activations advance
            pl.BlockSpec(w_packed.shape, lambda i: (0, 0, 0)),   # weights stay resident
            pl.BlockSpec(b_packed.shape, lambda i: (0, 0, 0)),   # biases stay resident
        ],
        out_specs=pl.BlockSpec((tb, LANE), lambda i: (i, 0)),
        # Total VMEM footprint < 1 MiB -> default scoped VMEM limit is plenty
        # on v5e/v6e/v7x; no explicit vmem_limit_bytes needed.
        compiler_params=pltpu.CompilerParams(
            dimension_semantics=("parallel",)),
    )(xu_p, w_packed, b_packed)

    # TODO(synk): for repeated rollout/ODE stepping, stack the time steps along
    # the batch axis (or add a step grid axis with these constant weight
    # index_maps) so the weight DMA is amortized over all steps.

    return out_p[:B, :1]   # ctg5 has a single output unit


# ----------------------------------------------------------------------------
# Init + pure-JAX reference (matching the PyTorch module)
# ----------------------------------------------------------------------------
def init_params(key, x_rom_dim, u_rom_dim):
    """Weights: nn.init.kaiming_uniform_ with defaults (a=0, fan_in) ->
    bound = sqrt(6/fan_in). Biases keep nn.Linear's default
    uniform(-1/sqrt(fan_in), 1/sqrt(fan_in)). Weights stored as [in, out]."""
    d_in = x_rom_dim + u_rom_dim
    H = (d_in + 1) * 2
    dims = [(d_in, H), (H, H), (H, H), (H, H), (H, 1)]

    params = []
    for (fin, fout) in dims:
        key, kw, kb = jax.random.split(key, 3)
        bound_w = jnp.sqrt(6.0 / fin)
        w = jax.random.uniform(kw, (fin, fout), jnp.float32, -bound_w, bound_w)
        bound_b = 1.0 / jnp.sqrt(fin)
        b = jax.random.uniform(kb, (fout,), jnp.float32, -bound_b, bound_b)
        params.append((w, b))
    return params


def reference_forward(x_rom, u_rom, params):
    (w1, b1), (w2, b2), (w3, b3), (w4, b4), (w5, b5) = params
    h = jnp.concatenate([x_rom, u_rom], axis=1)
    h = _leaky_relu(h @ w1 + b1)
    h = _leaky_relu(h @ w2 + b2)
    h = _leaky_relu(h @ w3 + b3)
    h = _leaky_relu(h @ w4 + b4)
    return jnp.maximum(h @ w5 + b5, 0.0)


if __name__ == "__main__":
    key = jax.random.PRNGKey(0)
    x_rom_dim, u_rom_dim, batch = 4, 4, 8

    key, kx, ku, kp = jax.random.split(key, 4)
    x_rom = jax.random.normal(kx, (batch, x_rom_dim), jnp.float32)
    u_rom = jax.random.normal(ku, (batch, u_rom_dim), jnp.float32)
    params = init_params(kp, x_rom_dim, u_rom_dim)

    ref = reference_forward(x_rom, u_rom, params)

    # f32-weight path: exact check against the pure-JAX reference.
    packed_f32 = prepare_params(params, jnp.float32)
    out_f32 = jax.block_until_ready(ctg_nn_forward(x_rom, u_rom, packed_f32))
    assert out_f32.shape == (batch, 1), out_f32.shape
    assert jnp.allclose(out_f32, ref, atol=1e-5, rtol=1e-4), (out_f32, ref)

    # bf16-weight path (default deployment config on v6e/v7x): loose check.
    packed_bf16 = prepare_params(params, jnp.bfloat16)
    out_bf16 = jax.block_until_ready(ctg_nn_forward(x_rom, u_rom, packed_bf16))
    assert out_bf16.shape == (batch, 1), out_bf16.shape
    assert jnp.max(jnp.abs(out_bf16 - ref)) < 1e-1, (out_bf16, ref)

    print("KERNEL_OK")
</pallas_src>

<mosaic_0001>
module attributes {stable_mosaic.version = 11 : i64} {
  func.func @ctg_kernel(%arg0: i32, %arg1: memref<8x128xf32, #tpu.memory_space<vmem>>, %arg2: memref<5x128x128xf32, #tpu.memory_space<vmem>>, %arg3: memref<5x1x128xf32, #tpu.memory_space<vmem>>, %arg4: memref<8x128xf32, #tpu.memory_space<vmem>>) attributes {dimension_semantics = [#tpu.dimension_semantics<parallel>], iteration_bounds = array<i64: 1>, scalar_prefetch = 0 : i64, scratch_operands = 0 : i64, tpu.core_type = #tpu.core_type<tc>, window_params = [{transform_indices = @transform_0, window_bounds = array<i64: 8, 128>}, {pipeline_mode = #tpu.pipeline_mode<synchronous>, transform_indices = @transform_1, window_bounds = array<i64: 5, 128, 128>}, {pipeline_mode = #tpu.pipeline_mode<synchronous>, transform_indices = @transform_2, window_bounds = array<i64: 5, 1, 128>}, {transform_indices = @transform_3, window_bounds = array<i64: 8, 128>}]} {
    %c0 = arith.constant 0 : index
    %c0_0 = arith.constant 0 : index
    %0 = vector.load %arg1[%c0, %c0_0] : memref<8x128xf32, #tpu.memory_space<vmem>>, vector<8x128xf32>
    %c0_1 = arith.constant 0 : index
    %c0_2 = arith.constant 0 : index
    %c0_3 = arith.constant 0 : index
    %1 = vector.load %arg2[%c0_1, %c0_2, %c0_3] : memref<5x128x128xf32, #tpu.memory_space<vmem>>, vector<1x128x128xf32>
    %2 = vector.shape_cast %1 : vector<1x128x128xf32> to vector<128x128xf32>
    %cst = arith.constant dense<0.000000e+00> : vector<8x128xf32>
    %3 = tpu.matmul %0, %2, %cst {dimension_numbers = #tpu.dot_dimension_numbers<[1], [0], [0], [1], [0, 0, 1, 1], [], []>} : vector<8x128xf32>, vector<128x128xf32>, vector<8x128xf32> -> vector<8x128xf32>
    %c0_4 = arith.constant 0 : index
    %c0_5 = arith.constant 0 : index
    %c0_6 = arith.constant 0 : index
    %4 = vector.load %arg3[%c0_4, %c0_5, %c0_6] : memref<5x1x128xf32, #tpu.memory_space<vmem>>, vector<1x1x128xf32>
    %5 = vector.shape_cast %4 : vector<1x1x128xf32> to vector<1x128xf32>
    %6 = vector.broadcast %5 : vector<1x128xf32> to vector<8x128xf32>
    %7 = arith.addf %3, %6 : vector<8x128xf32>
    %cst_7 = arith.constant 0.000000e+00 : f32
    %8 = vector.broadcast %cst_7 : f32 to vector<8x128xf32>
    %9 = arith.cmpf oge, %7, %8 : vector<8x128xf32>
    %cst_8 = arith.constant 0.00999999977 : f32
    %10 = vector.broadcast %cst_8 : f32 to vector<8x128xf32>
    %11 = arith.mulf %10, %7 : vector<8x128xf32>
    %12 = arith.select %9, %7, %11 : vector<8x128xi1>, vector<8x128xf32>
    %c1 = arith.constant 1 : index
    %c0_9 = arith.constant 0 : index
    %c0_10 = arith.constant 0 : index
    %13 = vector.load %arg2[%c1, %c0_9, %c0_10] : memref<5x128x128xf32, #tpu.memory_space<vmem>>, vector<1x128x128xf32>
    %14 = vector.shape_cast %13 : vector<1x128x128xf32> to vector<128x128xf32>
    %cst_11 = arith.constant dense<0.000000e+00> : vector<8x128xf32>
    %15 = tpu.matmul %12, %14, %cst_11 {dimension_numbers = #tpu.dot_dimension_numbers<[1], [0], [0], [1], [0, 0, 1, 1], [], []>} : vector<8x128xf32>, vector<128x128xf32>, vector<8x128xf32> -> vector<8x128xf32>
    %c1_12 = arith.constant 1 : index
    %c0_13 = arith.constant 0 : index
    %c0_14 = arith.constant 0 : index
    %16 = vector.load %arg3[%c1_12, %c0_13, %c0_14] : memref<5x1x128xf32, #tpu.memory_space<vmem>>, vector<1x1x128xf32>
    %17 = vector.shape_cast %16 : vector<1x1x128xf32> to vector<1x128xf32>
    %18 = vector.broadcast %17 : vector<1x128xf32> to vector<8x128xf32>
    %19 = arith.addf %15, %18 : vector<8x128xf32>
    %cst_15 = arith.constant 0.000000e+00 : f32
    %20 = vector.broadcast %cst_15 : f32 to vector<8x128xf32>
    %21 = arith.cmpf oge, %19, %20 : vector<8x128xf32>
    %cst_16 = arith.constant 0.00999999977 : f32
    %22 = vector.broadcast %cst_16 : f32 to vector<8x128xf32>
    %23 = arith.mulf %22, %19 : vector<8x128xf32>
    %24 = arith.select %21, %19, %23 : vector<8x128xi1>, vector<8x128xf32>
    %c2 = arith.constant 2 : index
    %c0_17 = arith.constant 0 : index
    %c0_18 = arith.constant 0 : index
    %25 = vector.load %arg2[%c2, %c0_17, %c0_18] : memref<5x128x128xf32, #tpu.memory_space<vmem>>, vector<1x128x128xf32>
    %26 = vector.shape_cast %25 : vector<1x128x128xf32> to vector<128x128xf32>
    %cst_19 = arith.constant dense<0.000000e+00> : vector<8x128xf32>
    %27 = tpu.matmul %24, %26, %cst_19 {dimension_numbers = #tpu.dot_dimension_numbers<[1], [0], [0], [1], [0, 0, 1, 1], [], []>} : vector<8x128xf32>, vector<128x128xf32>, vector<8x128xf32> -> vector<8x128xf32>
    %c2_20 = arith.constant 2 : index
    %c0_21 = arith.constant 0 : index
    %c0_22 = arith.constant 0 : index
    %28 = vector.load %arg3[%c2_20, %c0_21, %c0_22] : memref<5x1x128xf32, #tpu.memory_space<vmem>>, vector<1x1x128xf32>
    %29 = vector.shape_cast %28 : vector<1x1x128xf32> to vector<1x128xf32>
    %30 = vector.broadcast %29 : vector<1x128xf32> to vector<8x128xf32>
    %31 = arith.addf %27, %30 : vector<8x128xf32>
    %cst_23 = arith.constant 0.000000e+00 : f32
    %32 = vector.broadcast %cst_23 : f32 to vector<8x128xf32>
    %33 = arith.cmpf oge, %31, %32 : vector<8x128xf32>
    %cst_24 = arith.constant 0.00999999977 : f32
    %34 = vector.broadcast %cst_24 : f32 to vector<8x128xf32>
    %35 = arith.mulf %34, %31 : vector<8x128xf32>
    %36 = arith.select %33, %31, %35 : vector<8x128xi1>, vector<8x128xf32>
    %c3 = arith.constant 3 : index
    %c0_25 = arith.constant 0 : index
    %c0_26 = arith.constant 0 : index
    %37 = vector.load %arg2[%c3, %c0_25, %c0_26] : memref<5x128x128xf32, #tpu.memory_space<vmem>>, vector<1x128x128xf32>
    %38 = vector.shape_cast %37 : vector<1x128x128xf32> to vector<128x128xf32>
    %cst_27 = arith.constant dense<0.000000e+00> : vector<8x128xf32>
    %39 = tpu.matmul %36, %38, %cst_27 {dimension_numbers = #tpu.dot_dimension_numbers<[1], [0], [0], [1], [0, 0, 1, 1], [], []>} : vector<8x128xf32>, vector<128x128xf32>, vector<8x128xf32> -> vector<8x128xf32>
    %c3_28 = arith.constant 3 : index
    %c0_29 = arith.constant 0 : index
    %c0_30 = arith.constant 0 : index
    %40 = vector.load %arg3[%c3_28, %c0_29, %c0_30] : memref<5x1x128xf32, #tpu.memory_space<vmem>>, vector<1x1x128xf32>
    %41 = vector.shape_cast %40 : vector<1x1x128xf32> to vector<1x128xf32>
    %42 = vector.broadcast %41 : vector<1x128xf32> to vector<8x128xf32>
    %43 = arith.addf %39, %42 : vector<8x128xf32>
    %cst_31 = arith.constant 0.000000e+00 : f32
    %44 = vector.broadcast %cst_31 : f32 to vector<8x128xf32>
    %45 = arith.cmpf oge, %43, %44 : vector<8x128xf32>
    %cst_32 = arith.constant 0.00999999977 : f32
    %46 = vector.broadcast %cst_32 : f32 to vector<8x128xf32>
    %47 = arith.mulf %46, %43 : vector<8x128xf32>
    %48 = arith.select %45, %43, %47 : vector<8x128xi1>, vector<8x128xf32>
    %c4 = arith.constant 4 : index
    %c0_33 = arith.constant 0 : index
    %c0_34 = arith.constant 0 : index
    %49 = vector.load %arg2[%c4, %c0_33, %c0_34] : memref<5x128x128xf32, #tpu.memory_space<vmem>>, vector<1x128x128xf32>
    %50 = vector.shape_cast %49 : vector<1x128x128xf32> to vector<128x128xf32>
    %cst_35 = arith.constant dense<0.000000e+00> : vector<8x128xf32>
    %51 = tpu.matmul %48, %50, %cst_35 {dimension_numbers = #tpu.dot_dimension_numbers<[1], [0], [0], [1], [0, 0, 1, 1], [], []>} : vector<8x128xf32>, vector<128x128xf32>, vector<8x128xf32> -> vector<8x128xf32>
    %c4_36 = arith.constant 4 : index
    %c0_37 = arith.constant 0 : index
    %c0_38 = arith.constant 0 : index
    %52 = vector.load %arg3[%c4_36, %c0_37, %c0_38] : memref<5x1x128xf32, #tpu.memory_space<vmem>>, vector<1x1x128xf32>
    %53 = vector.shape_cast %52 : vector<1x1x128xf32> to vector<1x128xf32>
    %54 = vector.broadcast %53 : vector<1x128xf32> to vector<8x128xf32>
    %55 = arith.addf %51, %54 : vector<8x128xf32>
    %cst_39 = arith.constant 0.000000e+00 : f32
    %56 = vector.broadcast %cst_39 : f32 to vector<8x128xf32>
    %57 = arith.maximumf %55, %56 : vector<8x128xf32>
    %c0_40 = arith.constant 0 : index
    %c0_41 = arith.constant 0 : index
    %58 = vector.load %arg4[%c0_40, %c0_41] : memref<8x128xf32, #tpu.memory_space<vmem>>, vector<8x128xf32>
    tpu.vector_store %arg4[%c0_40, %c0_41], %57 {strides = array<i32>} : memref<8x128xf32, #tpu.memory_space<vmem>>, vector<8x128xf32>,
    return
  }
  func.func @transform_0(%arg0: i32) -> (i32, i32) {
    %c0_i32 = arith.constant 0 : i32
    %c0_i32_0 = arith.constant 0 : i32
    return %arg0, %c0_i32 : i32, i32
  }
  func.func @transform_1(%arg0: i32) -> (i32, i32, i32) {
    %c0_i32 = arith.constant 0 : i32
    %c0_i32_0 = arith.constant 0 : i32
    %c0_i32_1 = arith.constant 0 : i32
    %c0_i32_2 = arith.constant 0 : i32
    return %c0_i32, %c0_i32_0, %c0_i32_1 : i32, i32, i32
  }
  func.func @transform_2(%arg0: i32) -> (i32, i32, i32) {
    %c0_i32 = arith.constant 0 : i32
    %c0_i32_0 = arith.constant 0 : i32
    %c0_i32_1 = arith.constant 0 : i32
    %c0_i32_2 = arith.constant 0 : i32
    return %c0_i32, %c0_i32_0, %c0_i32_1 : i32, i32, i32
  }
  func.func @transform_3(%arg0: i32) -> (i32, i32) {
    %c0_i32 = arith.constant 0 : i32
    %c0_i32_0 = arith.constant 0 : i32
    return %arg0, %c0_i32 : i32, i32
  }
}

</mosaic_0001>

<bundles_post_ra>
// kernel: ctg_nn_forward.1
= control target key start
LH: loop header
LB: loop body
LE: loop exit
PB: predicated region body
PF: predicated region fallthrough
CT: control target
= control target key end

     0   :  { %8 = vsyncpa [#allocation3], 0  ;;  %s940_s12 = smov [#allocation2]   ;;  %s1049_s0 = inlined_call_operand.vmem [shape: f32[8,128], index: 0, kind: input, shape index: {}]   ;;  %s1050_s1 = inlined_call_operand.hbm [shape: f32[5,128,128], index: 1, kind: input, shape index: {}]   ;;  %s1051_s2 = inlined_call_operand.vmem [shape: f32[5,1,128], index: 2, kind: input, shape index: {}]   ;;  %s1052_s3 = inlined_call_operand.vmem [shape: f32[8,128], index: 3, kind: output, shape index: {}]  }
   0x1   :  { %s16_s13 = sshll.u32 %s940_s12, 4  ;;  %s916_s16 = scalar_lea.hbm %s1050_s1, 10240  ;;  %s17_s13 = int_to_ptr.vmem [resolvable:$true] %s16_s13 }
   0x2   :  { %p917_p0 = scmp.ne.s32.totalorder %s1050_s1, %s916_s16  ;;  %p920_p1 = scmp.lt.u32.totalorder %s916_s16, %s1050_s1 }
   0x4   :  { %p922_p2 = pnand %p920_p1, %p917_p0 }
   0x6   :  { %925 = shalt.err (!%p922_p2)
}
   0x7   :  { %s926_s21 = scalar_lea.vmem %s17_s13, 10240  ;;  %p931_p4 = scmp.lt.s32.totalorder %s17_s13, %s17_s13 }
   0x8   :  { %p927_p3 = scmp.ne.s32.totalorder %s17_s13, %s926_s21  ;;  %p932_p5 = scmp.lt.s32.totalorder %s926_s21, %s926_s21 }
   0xa   :  { %p933_p6 = por %p932_p5, %p931_p4 }
   0xc   :  { %p934_p7 = pnand %p933_p6, %p927_p3 }
   0xe   :  { %937 = shalt.err (!%p934_p7)
}
   0xf   :  { %s941_s22 = smov 128   ;;  %s942_s23 = smov 8  }
  0x10   :  { %22 = dma.hbm_to_vmem [thread:$0]  %s1050_s1, 10240, %s17_s13, [#allocation3], %s941_s22, %s941_s22, %s942_s23  }
  0x11   :  { %938 = dma.done.wait [#allocation3], 10240  }
  0x12   :  { %939 = vsyncadd [#allocation3], 4294957056  ;;  %v943_v0 = vmov 0.0|0.0   ;;  %vm944_vm0 = vmmov 0   ;;  %v945_v1 = vmov 0.0   ;;  %v29_v2 = vld [vmem:[#allocation2] sm:$0xff] }
  0x13   :  { %790 = vmatprep.subr.bf16.mxu0 %v943_v0  ;;  %647 = vmatprep.mubr.msk.f32.mxu0 %vm944_vm0, %v945_v1  ;;  %v30_v3 = vld [vmem:[#allocation2 + $0x8] sm:$0xff]  ;;  %v31_v4 = vld [vmem:[#allocation2 + $0x10] sm:$0xff]  ;;  %v32_v6 = vld [vmem:[#allocation2 + $0x18] sm:$0xff] }
  0x14   :  { %814 = vmatprep.subr.bf16.mxu1 %v943_v0  ;;  %682 = vmatprep.mubr.msk.f32.mxu1 %vm944_vm0, %v945_v1  ;;  %v791_v5 = vpack.c.bf16 %v30_v3, %v29_v2  ;;  %v794_v7 = vpack.c.bf16 %v32_v6, %v31_v4  ;;  %v33_v8 = vld [vmem:[#allocation2 + $0x20] sm:$0xff]  ;;  %v34_v9 = vld [vmem:[#allocation2 + $0x28] sm:$0xff]  ;;  %v128_v12 = vld [vmem:[#allocation2 + $0x90] sm:$0xff] }
  0x15   :  { %v126_v10 = vld [vmem:[#allocation2 + $0x80] sm:$0xff]  ;;  %v127_v11 = vld [vmem:[#allocation2 + $0x88] sm:$0xff]  ;;  %v129_v13 = vld [vmem:[#allocation2 + $0x98] sm:$0xff]  ;;  %v797_v14 = vpack.c.bf16 %v34_v9, %v33_v8 }
  0x16   :  { %792 = vmatpush3.bf16.msra.mxu0 %v791_v5  ;;  %v815_v15 = vpack.c.bf16 %v127_v11, %v126_v10  ;;  %v35_v16 = vld [vmem:[#allocation2 + $0x30] sm:$0xff]  ;;  %v36_v17 = vld [vmem:[#allocation2 + $0x38] sm:$0xff]  ;;  %v818_v18 = vpack.c.bf16 %v129_v13, %v128_v12  ;;  %v130_v19 = vld [vmem:[#allocation2 + $0xa0] sm:$0xff] }
  0x17   :  { %793 = vmatprep.subr.bf16.mxu0 %v943_v0  ;;  %v131_v20 = vld [vmem:[#allocation2 + $0xa8] sm:$0xff]  ;;  %v800_v21 = vpack.c.bf16 %v36_v17, %v35_v16  ;;  %v37_v22 = vld [vmem:[#allocation2 + $0x40] sm:$0xff]  ;;  %v132_v25 = vld [vmem:[#allocation2 + $0xb0] sm:$0xff] }
  0x18   :  { %816 = vmatpush3.bf16.msra.mxu1 %v815_v15  ;;  %v38_v23 = vld [vmem:[#allocation2 + $0x48] sm:$0xff]  ;;  %v821_v24 = vpack.c.bf16 %v131_v20, %v130_v19  ;;  %v133_v26 = vld [vmem:[#allocation2 + $0xb8] sm:$0xff]  ;;  %v39_v28 = vld [vmem:[#allocation2 + $0x50] sm:$0xff] }
  0x19   :  { %817 = vmatprep.subr.bf16.mxu1 %v943_v0  ;;  %v803_v27 = vpack.c.bf16 %v38_v23, %v37_v22  ;;  %v40_v29 = vld [vmem:[#allocation2 + $0x58] sm:$0xff]  ;;  %v824_v30 = vpack.c.bf16 %v133_v26, %v132_v25  ;;  %v134_v31 = vld [vmem:[#allocation2 + $0xc0] sm:$0xff]  ;;  %v135_v32 = vld [vmem:[#allocation2 + $0xc8] sm:$0xff] }
  0x1a   :  { %795 = vmatpush3.bf16.msra.mxu0 %v794_v7  ;;  %v806_v33 = vpack.c.bf16 %v40_v29, %v39_v28  ;;  %v41_v34 = vld [vmem:[#allocation2 + $0x60] sm:$0xff]  ;;  %v42_v35 = vld [vmem:[#allocation2 + $0x68] sm:$0xff]  ;;  %v827_v36 = vpack.c.bf16 %v135_v32, %v134_v31  ;;  %v136_v37 = vld [vmem:[#allocation2 + $0xd0] sm:$0xff] }
  0x1b   :  { %796 = vmatprep.subr.bf16.mxu0 %v943_v0  ;;  %v137_v38 = vld [vmem:[#allocation2 + $0xd8] sm:$0xff]  ;;  %v809_v39 = vpack.c.bf16 %v42_v35, %v41_v34  ;;  %v43_v40 = vld [vmem:[#allocation2 + $0x70] sm:$0xff]  ;;  %v138_v43 = vld [vmem:[#allocation2 + $0xe0] sm:$0xff] }
  0x1c   :  { %819 = vmatpush3.bf16.msra.mxu1 %v818_v18  ;;  %v44_v41 = vld [vmem:[#allocation2 + $0x78] sm:$0xff]  ;;  %v830_v42 = vpack.c.bf16 %v137_v38, %v136_v37  ;;  %v139_v44 = vld [vmem:[#allocation2 + $0xe8] sm:$0xff]  ;;  %v28_v47 = vld [vmem:[%s1049_s0] sm:$0xff] }
  0x1d   :  { %820 = vmatprep.subr.bf16.mxu1 %v943_v0  ;;  %v812_v45 = vpack.c.bf16 %v44_v41, %v43_v40  ;;  %v833_v46 = vpack.c.bf16 %v139_v44, %v138_v43  ;;  %v140_v48 = vld [vmem:[#allocation2 + $0xf0] sm:$0xff]  ;;  %v141_v49 = vld [vmem:[#allocation2 + $0xf8] sm:$0xff]  ;;  %v224_v51 = vld [vmem:[#allocation2 + $0x100] sm:$0xff] }
  0x1e   :  { %798 = vmatpush3.bf16.msra.mxu0 %v797_v14  ;;  %v836_v50 = vpack.c.bf16 %v141_v49, %v140_v48  ;;  %v225_v52 = vld [vmem:[#allocation2 + $0x108] sm:$0xff]  ;;  %v226_v53 = vld [vmem:[#allocation2 + $0x110] sm:$0xff]  ;;  %v227_v55 = vld [vmem:[#allocation2 + $0x118] sm:$0xff] }
  0x1f   :  { %799 = vmatprep.subr.bf16.mxu0 %v943_v0  ;;  %v839_v54 = vpack.c.bf16 %v225_v52, %v224_v51  ;;  %v842_v56 = vpack.c.bf16 %v227_v55, %v226_v53  ;;  %v228_v57 = vld [vmem:[#allocation2 + $0x120] sm:$0xff]  ;;  %v229_v58 = vld [vmem:[#allocation2 + $0x128] sm:$0xff]  ;;  %v230_v60 = vld [vmem:[#allocation2 + $0x130] sm:$0xff] }
  0x20   :  { %822 = vmatpush3.bf16.msra.mxu1 %v821_v24  ;;  %v845_v59 = vpack.c.bf16 %v229_v58, %v228_v57  ;;  %v231_v61 = vld [vmem:[#allocation2 + $0x138] sm:$0xff]  ;;  %v232_v63 = vld [vmem:[#allocation2 + $0x140] sm:$0xff]  ;;  %v233_v2 = vld [vmem:[#allocation2 + $0x148] sm:$0xff] }
  0x21   :  { %823 = vmatprep.subr.bf16.mxu1 %v943_v0  ;;  %v848_v62 = vpack.c.bf16 %v231_v61, %v230_v60  ;;  %v851_v3 = vpack.c.bf16 %v233_v2, %v232_v63  ;;  %v234_v4 = vld [vmem:[#allocation2 + $0x150] sm:$0xff]  ;;  %v235_v5 = vld [vmem:[#allocation2 + $0x158] sm:$0xff]  ;;  %v236_v7 = vld [vmem:[#allocation2 + $0x160] sm:$0xff] }
  0x22   :  { %801 = vmatpush3.bf16.msra.mxu0 %v800_v21  ;;  %v854_v6 = vpack.c.bf16 %v235_v5, %v234_v4  ;;  %v237_v8 = vld [vmem:[#allocation2 + $0x168] sm:$0xff]  ;;  %v521_v10 = vld [vmem:[%s1051_s2] ss:$0 sm:$0xff]  ;;  %v238_v16 = vld [vmem:[#allocation2 + $0x170] sm:$0xff] }
  0x23   :  { %802 = vmatprep.subr.bf16.mxu0 %v943_v0  ;;  %v857_v9 = vpack.c.bf16 %v237_v8, %v236_v7  ;;  %v239_v17 = vld [vmem:[#allocation2 + $0x178] sm:$0xff]  ;;  %v322_v19 = vld [vmem:[#allocation2 + $0x180] sm:$0xff]  ;;  %v323_v20 = vld [vmem:[#allocation2 + $0x188] sm:$0xff] }
  0x24   :  { %825 = vmatpush3.bf16.msra.mxu1 %v824_v30  ;;  %v860_v18 = vpack.c.bf16 %v239_v17, %v238_v16  ;;  %v324_v21 = vld [vmem:[#allocation2 + $0x190] sm:$0xff]  ;;  %v863_v22 = vpack.c.bf16 %v323_v20, %v322_v19  ;;  %v325_v23 = vld [vmem:[#allocation2 + $0x198] sm:$0xff]  ;;  %v326_v25 = vld [vmem:[#allocation2 + $0x1a0] sm:$0xff] }
  0x25   :  { %826 = vmatprep.subr.bf16.mxu1 %v943_v0  ;;  %v866_v24 = vpack.c.bf16 %v325_v23, %v324_v21  ;;  %v327_v26 = vld [vmem:[#allocation2 + $0x1a8] sm:$0xff]  ;;  %v328_v28 = vld [vmem:[#allocation2 + $0x1b0] sm:$0xff]  ;;  %v329_v29 = vld [vmem:[#allocation2 + $0x1b8] sm:$0xff] }
  0x26   :  { %804 = vmatpush3.bf16.msra.mxu0 %v803_v27  ;;  %v869_v27 = vpack.c.bf16 %v327_v26, %v326_v25  ;;  %v872_v30 = vpack.c.bf16 %v329_v29, %v328_v28  ;;  %v330_v31 = vld [vmem:[#allocation2 + $0x1c0] sm:$0xff]  ;;  %v331_v32 = vld [vmem:[#allocation2 + $0x1c8] sm:$0xff]  ;;  %v332_v34 = vld [vmem:[#allocation2 + $0x1d0] sm:$0xff] }
  0x27   :  { %805 = vmatprep.subr.bf16.mxu0 %v943_v0  ;;  %v333_v35 = vld [vmem:[#allocation2 + $0x1d8] sm:$0xff]  ;;  %v334_v37 = vld [vmem:[#allocation2 + $0x1e0] sm:$0xff]  ;;  %v335_v38 = vld [vmem:[#allocation2 + $0x1e8] sm:$0xff] }
  0x28   :  { %828 = vmatpush3.bf16.msra.mxu1 %v827_v36  ;;  %v878_v36 = vpack.c.bf16 %v333_v35, %v332_v34  ;;  %v523_v40 = vld [vmem:[%s1051_s2 + $0x1] ss:$0 sm:$0xff]  ;;  %v422_v51 = vld [vmem:[#allocation2 + $0x210] sm:$0xff]  ;;  %v423_v53 = vld [vmem:[#allocation2 + $0x218] sm:$0xff] }
  0x29   :  { %829 = vmatprep.subr.bf16.mxu1 %v943_v0  ;;  %v420_v49 = vld [vmem:[#allocation2 + $0x200] sm:$0xff]  ;;  %v427_v58 = vld [vmem:[#allocation2 + $0x238] sm:$0xff]  ;;  %v429_v61 = vld [vmem:[#allocation2 + $0x248] sm:$0xff] }
  0x2a   :  { %807 = vmatpush3.bf16.msra.mxu0 %v806_v33  ;;  %v875_v33 = vpack.c.bf16 %v331_v32, %v330_v31  ;;  %v424_v55 = vld [vmem:[#allocation2 + $0x220] sm:$0xff]  ;;  %v430_v63 = vld [vmem:[#allocation2 + $0x250] sm:$0xff]  ;;  %v431_v2 = vld [vmem:[#allocation2 + $0x258] sm:$0xff] }
  0x2b   :  { %808 = vmatprep.subr.bf16.mxu0 %v943_v0  ;;  %v428_v60 = vld [vmem:[#allocation2 + $0x240] sm:$0xff]  ;;  %v433_v5 = vld [vmem:[#allocation2 + $0x268] sm:$0xff] }
  0x2c   :  { %831 = vmatpush3.bf16.msra.mxu1 %v830_v42  ;;  %v432_v4 = vld [vmem:[#allocation2 + $0x260] sm:$0xff] }
  0x2d   :  { %832 = vmatprep.subr.bf16.mxu1 %v943_v0  ;;  %v525_v7 = vld [vmem:[%s1051_s2 + $0x2] ss:$0 sm:$0xff]  ;;  %v527_v16 = vld [vmem:[%s1051_s2 + $0x3] ss:$0 sm:$0xff]  ;;  %v529_v21 = vld [vmem:[%s1051_s2 + $0x4] ss:$0 sm:$0xff] }
  0x2e   :  { %810 = vmatpush3.bf16.msra.mxu0 %v809_v39  ;;  %v881_v39 = vpack.c.bf16 %v335_v38, %v334_v37 }
  0x2f   :  { %811 = vmatprep.subr.bf16.mxu0 %v943_v0 }
  0x30   :  { %834 = vmatpush3.bf16.msra.mxu1 %v833_v46  ;;  %v336_v46 = vld [vmem:[#allocation2 + $0x1f0] sm:$0xff] }
  0x31   :  { %835 = vmatprep.subr.bf16.mxu1 %v943_v0 }
  0x32   :  { %813 = vmatpush3.bf16.msra.mxu0 %v812_v45 }
  0x33   :  { %838 = vmatprep.subr.bf16.mxu0 %v943_v0 }
  0x34   :  { %837 = vmatpush3.bf16.msra.mxu1 %v836_v50  ;;  %v421_v50 = vld [vmem:[#allocation2 + $0x208] sm:$0xff] }
  0x35   :  { %648 = vmatmul.mubr.f32.vlgmr.msra.gmra.mrb[0].mxu0 %v28_v47  ;;  %862 = vmatprep.subr.bf16.mxu1 %v943_v0  ;;  %v337_v47 = vld [vmem:[#allocation2 + $0x1f8] sm:$0xff]  ;;  %v887_v52 = vpack.c.bf16 %v421_v50, %v420_v49 }
  0x36   :  { %717 = vmatprep.mubr.msk.f32.mxu0 %vm944_vm0, %v945_v1  ;;  %840 = vmatpush3.bf16.msra.mxu0 %v839_v54  ;;  %v884_v48 = vpack.c.bf16 %v337_v47, %v336_v46  ;;  %v890_v54 = vpack.c.bf16 %v423_v53, %v422_v51 }
  0x37   :  { %841 = vmatprep.subr.bf16.mxu0 %v943_v0 }
  0x3a   :  { %843 = vmatpush3.bf16.msra.mxu0 %v842_v56  ;;  %v425_v56 = vld [vmem:[#allocation2 + $0x228] sm:$0xff] }
  0x3b   :  { %844 = vmatprep.subr.bf16.mxu0 %v943_v0  ;;  %v893_v57 = vpack.c.bf16 %v425_v56, %v424_v55 }
  0x3e   :  { %846 = vmatpush3.bf16.msra.mxu0 %v845_v59 }
  0x3f   :  { %847 = vmatprep.subr.bf16.mxu0 %v943_v0 }
  0x42   :  { %849 = vmatpush3.bf16.msra.mxu0 %v848_v62  ;;  %v899_v62 = vpack.c.bf16 %v429_v61, %v428_v60 }
  0x43   :  { %850 = vmatprep.subr.bf16.mxu0 %v943_v0 }
  0x46   :  { %852 = vmatpush3.bf16.msra.mxu0 %v851_v3  ;;  %v902_v3 = vpack.c.bf16 %v431_v2, %v430_v63 }
  0x47   :  { %853 = vmatprep.subr.bf16.mxu0 %v943_v0 }
  0x4a   :  { %855 = vmatpush3.bf16.msra.mxu0 %v854_v6  ;;  %v905_v6 = vpack.c.bf16 %v433_v5, %v432_v4 }
  0x4b   :  { %856 = vmatprep.subr.bf16.mxu0 %v943_v0 }
  0x4e   :  { %858 = vmatpush3.bf16.msra.mxu0 %v857_v9 }
  0x4f   :  { %859 = vmatprep.subr.bf16.mxu0 %v943_v0 }
  0x52   :  { %861 = vmatpush3.bf16.msra.mxu0 %v860_v18 }
  0x53   :  { %886 = vmatprep.subr.bf16.mxu0 %v943_v0 }
 0x108   :  { %v118_v11 = vpop.f32.mrb[0].mxu0 }
 0x109   :  { %v119_v12 = vadd.f32 %v521_v10, %v118_v11  ;;  %v649_v13 = vpop.f32.mrb[1].mxu0 }
 0x10a   :  { %v434_v13 = vld [vmem:[#allocation2 + $0x270] sm:$0xff] }
 0x10b   :  { %v123_v14 = vmul.f32 0.01, %v119_v12  ;;  %vm122_vm1 = vcmp.ge.f32.partialorder %v119_v12, 0.0 }
 0x10d   :  { %v124_v15 = vsel %vm122_vm1, %v119_v12, %v123_v14  ;;  %v435_v14 = vld [vmem:[#allocation2 + $0x278] sm:$0xff] }
 0x10e   :  { %683 = vmatmul.mubr.f32.vlgmr.msra.gmra.mrb[0].mxu1 %v124_v15  ;;  %v908_v15 = vpack.c.bf16 %v435_v14, %v434_v13 }
 0x10f   :  { %752 = vmatprep.mubr.msk.f32.mxu1 %vm944_vm0, %v945_v1  ;;  %864 = vmatpush3.bf16.msra.mxu1 %v863_v22 }
 0x110   :  { %865 = vmatprep.subr.bf16.mxu1 %v943_v0 }
 0x113   :  { %867 = vmatpush3.bf16.msra.mxu1 %v866_v24 }
 0x114   :  { %868 = vmatprep.subr.bf16.mxu1 %v943_v0 }
 0x117   :  { %870 = vmatpush3.bf16.msra.mxu1 %v869_v27 }
 0x118   :  { %871 = vmatprep.subr.bf16.mxu1 %v943_v0 }
 0x11b   :  { %873 = vmatpush3.bf16.msra.mxu1 %v872_v30 }
 0x11c   :  { %874 = vmatprep.subr.bf16.mxu1 %v943_v0 }
 0x11f   :  { %876 = vmatpush3.bf16.msra.mxu1 %v875_v33 }
 0x120   :  { %877 = vmatprep.subr.bf16.mxu1 %v943_v0 }
 0x123   :  { %879 = vmatpush3.bf16.msra.mxu1 %v878_v36 }
 0x124   :  { %880 = vmatprep.subr.bf16.mxu1 %v943_v0 }
 0x127   :  { %882 = vmatpush3.bf16.msra.mxu1 %v881_v39 }
 0x128   :  { %883 = vmatprep.subr.bf16.mxu1 %v943_v0 }
 0x12b   :  { %885 = vmatpush3.bf16.msra.mxu1 %v884_v48 }
 0x1e1   :  { %v216_v41 = vpop.f32.mrb[0].mxu1 }
 0x1e2   :  { %v217_v42 = vadd.f32 %v523_v40, %v216_v41  ;;  %v684_v43 = vpop.f32.mrb[1].mxu1 }
 0x1e4   :  { %vm220_vm2 = vcmp.ge.f32.partialorder %v217_v42, 0.0  ;;  %v221_v44 = vmul.f32 0.01, %v217_v42 }
 0x1e6   :  { %v222_v45 = vsel %vm220_vm2, %v217_v42, %v221_v44 }
 0x1e7   :  { %718 = vmatmul.mubr.f32.vlgmr.msra.gmra.mrb[2].mxu0 %v222_v45 }
 0x1e8   :  { %787 = vmatprep.mubr.msk.f32.mxu0 %vm944_vm0, %v945_v1  ;;  %888 = vmatpush3.bf16.msra.mxu0 %v887_v52  ;;  %v426_v1 = vld [vmem:[#allocation2 + $0x230] sm:$0xff] }
 0x1e9   :  { %889 = vmatprep.subr.bf16.mxu0 %v943_v0  ;;  %v896_v59 = vpack.c.bf16 %v427_v58, %v426_v1 }
 0x1ec   :  { %891 = vmatpush3.bf16.msra.mxu0 %v890_v54 }
 0x1ed   :  { %892 = vmatprep.subr.bf16.mxu0 %v943_v0 }
 0x1f0   :  { %894 = vmatpush3.bf16.msra.mxu0 %v893_v57 }
 0x1f1   :  { %895 = vmatprep.subr.bf16.mxu0 %v943_v0 }
 0x1f4   :  { %897 = vmatpush3.bf16.msra.mxu0 %v896_v59 }
 0x1f5   :  { %898 = vmatprep.subr.bf16.mxu0 %v943_v0 }
 0x1f8   :  { %900 = vmatpush3.bf16.msra.mxu0 %v899_v62 }
 0x1f9   :  { %901 = vmatprep.subr.bf16.mxu0 %v943_v0 }
 0x1fc   :  { %903 = vmatpush3.bf16.msra.mxu0 %v902_v3 }
 0x1fd   :  { %904 = vmatprep.subr.bf16.mxu0 %v943_v0 }
 0x200   :  { %906 = vmatpush3.bf16.msra.mxu0 %v905_v6 }
 0x201   :  { %907 = vmatprep.subr.bf16.mxu0 %v943_v0 }
 0x204   :  { %909 = vmatpush3.bf16.msra.mxu0 %v908_v15 }
 0x2ba   :  { %v314_v8 = vpop.f32.mrb[2].mxu0 }
 0x2bb   :  { %v315_v9 = vadd.f32 %v525_v7, %v314_v8  ;;  %v719_v10 = vpop.f32.mrb[3].mxu0 }
 0x2bd   :  { %vm318_vm3 = vcmp.ge.f32.partialorder %v315_v9, 0.0  ;;  %v319_v11 = vmul.f32 0.01, %v315_v9 }
 0x2bf   :  { %v320_v12 = vsel %vm318_vm3, %v315_v9, %v319_v11 }
 0x2c0   :  { %753 = vmatmul.mubr.f32.vlgmr.msra.gmra.mrb[2].mxu1 %v320_v12 }
 0x393   :  { %v412_v0 = vpop.f32.mrb[2].mxu1 }
 0x394   :  { %v413_v17 = vadd.f32 %v527_v16, %v412_v0  ;;  %v754_v18 = vpop.f32.mrb[3].mxu1 }
 0x396   :  { %vm416_vm4 = vcmp.ge.f32.partialorder %v413_v17, 0.0  ;;  %v417_v19 = vmul.f32 0.01, %v413_v17 }
 0x398   :  { %v418_v20 = vsel %vm416_vm4, %v413_v17, %v417_v19 }
 0x399   :  { %788 = vmatmul.mubr.f32.vlgmr.msra.gmra.mrb[4].mxu0 %v418_v20 }
 0x46c   :  { %v510_v22 = vpop.f32.mrb[4].mxu0 }
 0x46d   :  { %v511_v23 = vadd.f32 %v529_v21, %v510_v22  ;;  %v789_v24 = vpop.f32.mrb[5].mxu0 }
 0x46f   :  { %v514_v25 = vmax.f32 %v511_v23, 0.0 }
 0x471   :  { %515 = vst [vmem:[%s1052_s3] sm:$0xff] %v514_v25 }
 0x472   :  { %520 = vsyncpa [#allocation3], 1 }

</bundles_post_ra>
